<compile_context>
chip_gen: v6e
topology: v6e:2x2x1
jax: 0.10.0
libtpu: 0.0.40
codegen_flags: <defaults>
</compile_context>

<pallas_src>
import functools

import jax
import jax.numpy as jnp
from jax.experimental import pallas as pl
from jax.experimental.pallas import tpu as pltpu


_SQRT_2_OVER_PI = 0.7978845608028654


def _gelu_tanh(x):
    # transformers-style approximate GELU ("gelu_new"); tanh runs on the EUP.
    # TODO(synk): switch to exact erf-based GELU if config.hidden_act demands it.
    return 0.5 * x * (1.0 + jnp.tanh(_SQRT_2_OVER_PI * (x + 0.044715 * x * x * x)))


def _dense_gelu_ln_kernel(x_ref, w_ref, b_ref, g_ref, beta_ref, o_ref, acc_ref, *, eps):
    # x_ref:    (TM, TK)   input rows for this tile
    # w_ref:    (TK, H)    weight slab (contraction-major)
    # b_ref:    (1, H)     linear bias
    # g_ref:    (1, H)     LayerNorm weight
    # beta_ref: (1, H)     LayerNorm bias
    # o_ref:    (TM, H)    output tile
    # acc_ref:  (TM, H)    f32 accumulator (resident across the K grid axis)
    k = pl.program_id(1)

    @pl.when(k == 0)
    def _init():
        acc_ref[...] = jnp.zeros_like(acc_ref)

    acc_ref[...] += jnp.dot(x_ref[...], w_ref[...], preferred_element_type=jnp.float32)

    @pl.when(k == pl.num_programs(1) - 1)
    def _finalize():
        h = acc_ref[...] + b_ref[...].astype(jnp.float32)          # (TM, H)
        a = _gelu_tanh(h)

        # LayerNorm over H: single pass (sum, sum of squares), biased variance
        # like torch.nn.LayerNorm; clamp var against f32 cancellation.
        hdim = a.shape[-1]
        s1 = jnp.sum(a, axis=-1, keepdims=True)
        s2 = jnp.sum(a * a, axis=-1, keepdims=True)
        mean = s1 / hdim
        var = jnp.maximum(s2 / hdim - mean * mean, 0.0)
        inv = jax.lax.rsqrt(var + eps)
        y = (a - mean) * inv
        y = y * g_ref[...].astype(jnp.float32) + beta_ref[...].astype(jnp.float32)
        o_ref[...] = y.astype(o_ref.dtype)


def _pick_tile(dim, target, multiple):
    """Largest t <= target with dim % t == 0 and t % multiple == 0; else the full dim."""
    if dim <= target:
        return dim
    t = (target // multiple) * multiple
    while t >= multiple:
        if dim % t == 0:
            return t
        t -= multiple
    return dim


def input_dense2d_forward(x, weight, bias, gamma, beta, *, eps=1e-12,
                          tm_target=256, tk_target=512):
    """x: (..., D_in); weight: (H, D_in) [PyTorch nn.Linear layout]; bias/gamma/beta: (H,)."""
    *lead, d_in = x.shape
    h_dim = weight.shape[0]
    m = 1
    for d in lead:
        m *= d

    x2 = x.reshape(m, d_in)
    w = weight.T                       # (D_in, H) — contraction-major for the MXU
    b2 = bias.reshape(1, h_dim)
    g2 = gamma.reshape(1, h_dim)
    beta2 = beta.reshape(1, h_dim)

    tm = _pick_tile(m, tm_target, 8)        # sublane multiple
    tk = _pick_tile(d_in, tk_target, 128)   # lane multiple
    grid = (m // tm, d_in // tk)

    in_bytes = jnp.dtype(x.dtype).itemsize
    # Double-buffered x/W/out blocks + f32 accumulator + tiny param slabs.
    vmem_est = (2 * (tm * tk + tk * h_dim) * in_bytes
                + 2 * tm * h_dim * in_bytes
                + tm * h_dim * 4
                + 6 * h_dim * 4)
    vmem_limit = int(min(max(2 * vmem_est, 32 << 20), 64 << 20))

    cost = pl.CostEstimate(
        flops=int(2 * m * d_in * h_dim + 12 * m * h_dim),
        transcendentals=int(m * h_dim + m),      # tanh per element + rsqrt per row
        bytes_accessed=int((m * d_in + d_in * h_dim + m * h_dim) * in_bytes),
    )

    kernel = functools.partial(_dense_gelu_ln_kernel, eps=eps)

    out2 = pl.pallas_call(
        kernel,
        out_shape=jax.ShapeDtypeStruct((m, h_dim), x.dtype),
        grid_spec=pltpu.PrefetchScalarGridSpec(
            num_scalar_prefetch=0,
            grid=grid,
            in_specs=[
                pl.BlockSpec((tm, tk), lambda i, k: (i, k)),       # x rows
                pl.BlockSpec((tk, h_dim), lambda i, k: (k, 0)),    # weight slab
                pl.BlockSpec((1, h_dim), lambda i, k: (0, 0)),     # bias
                pl.BlockSpec((1, h_dim), lambda i, k: (0, 0)),     # ln gamma
                pl.BlockSpec((1, h_dim), lambda i, k: (0, 0)),     # ln beta
            ],
            out_specs=pl.BlockSpec((tm, h_dim), lambda i, k: (i, 0)),
            scratch_shapes=[pltpu.VMEM((tm, h_dim), jnp.float32)],
        ),
        compiler_params=pltpu.CompilerParams(
            dimension_semantics=("parallel", "arbitrary"),
            vmem_limit_bytes=vmem_limit,
        ),
        cost_estimate=cost,
    )(x2, w, b2, g2, beta2)

    return out2.reshape(*lead, h_dim)


def reference_forward(x, weight, bias, gamma, beta, *, eps=1e-12):
    """Pure-JAX reference (same GELU variant) for the correctness check."""
    h = jnp.einsum("...i,oi->...o", x, weight) + bias
    a = _gelu_tanh(h)
    mean = jnp.mean(a, axis=-1, keepdims=True)
    var = jnp.mean((a - mean) ** 2, axis=-1, keepdims=True)
    y = (a - mean) * jax.lax.rsqrt(var + eps)
    return y * gamma + beta


if __name__ == "__main__":
    # Small config consistent with the module:
    #   img_size=(4, 4), in_channels=4 -> D_in = 64; hidden_size=32; eps=1e-12
    #   x: (batch=2, seq=8, D_in=64)
    B, S = 2, 8
    D_IN = 4 * 4 * 4
    H = 32
    EPS = 1e-12

    key = jax.random.PRNGKey(0)
    kx, kw, kb = jax.random.split(key, 3)

    x = jax.random.normal(kx, (B, S, D_IN), dtype=jnp.float32)
    weight = jax.random.normal(kw, (H, D_IN), dtype=jnp.float32) * 0.05
    bias = jax.random.normal(kb, (H,), dtype=jnp.float32) * 0.05
    gamma = jnp.ones((H,), dtype=jnp.float32)
    beta = jnp.zeros((H,), dtype=jnp.float32)

    out = input_dense2d_forward(x, weight, bias, gamma, beta, eps=EPS)
    out = jax.block_until_ready(out)

    ref = reference_forward(x, weight, bias, gamma, beta, eps=EPS)
    assert out.shape == (B, S, H)
    # Tolerance covers the MXU f32 multi-pass matmul precision path.
    assert jnp.allclose(out, ref, atol=5e-3, rtol=5e-3), "mismatch vs reference"

    print("KERNEL_OK")
</pallas_src>

<mosaic_0001>
module attributes {stable_mosaic.version = 11 : i64} {
  func.func @_dense_gelu_ln_kernel(%arg0: i32, %arg1: i32, %arg2: memref<16x64xf32, #tpu.memory_space<vmem>>, %arg3: memref<64x32xf32, #tpu.memory_space<vmem>>, %arg4: memref<1x32xf32, #tpu.memory_space<vmem>>, %arg5: memref<1x32xf32, #tpu.memory_space<vmem>>, %arg6: memref<1x32xf32, #tpu.memory_space<vmem>>, %arg7: memref<16x32xf32, #tpu.memory_space<vmem>>, %arg8: memref<16x32xf32, #tpu.memory_space<vmem>>) attributes {dimension_semantics = [#tpu.dimension_semantics<parallel>, #tpu.dimension_semantics<arbitrary>], iteration_bounds = array<i64: 1, 1>, scalar_prefetch = 0 : i64, scratch_operands = 1 : i64, tpu.core_type = #tpu.core_type<tc>, window_params = [{transform_indices = @transform_0, window_bounds = array<i64: 16, 64>}, {transform_indices = @transform_1, window_bounds = array<i64: 64, 32>}, {pipeline_mode = #tpu.pipeline_mode<synchronous>, transform_indices = @transform_2, window_bounds = array<i64: 1, 32>}, {pipeline_mode = #tpu.pipeline_mode<synchronous>, transform_indices = @transform_3, window_bounds = array<i64: 1, 32>}, {pipeline_mode = #tpu.pipeline_mode<synchronous>, transform_indices = @transform_4, window_bounds = array<i64: 1, 32>}, {transform_indices = @transform_5, window_bounds = array<i64: 16, 32>}]} {
    %c0_i32 = arith.constant 0 : i32
    %0 = arith.cmpi eq, %arg1, %c0_i32 : i32
    %1 = arith.extui %0 : i1 to i32
    %c0_i32_0 = arith.constant 0 : i32
    %2 = arith.cmpi ne, %1, %c0_i32_0 : i32
    scf.if %2 {
      %cst_10 = arith.constant 0.000000e+00 : f32
      %12 = vector.broadcast %cst_10 : f32 to vector<16x32xf32>
      %c0_11 = arith.constant 0 : index
      %c0_12 = arith.constant 0 : index
      %13 = vector.load %arg8[%c0_11, %c0_12] : memref<16x32xf32, #tpu.memory_space<vmem>>, vector<16x32xf32>
      tpu.vector_store %arg8[%c0_11, %c0_12], %12 {strides = array<i32>} : memref<16x32xf32, #tpu.memory_space<vmem>>, vector<16x32xf32>,
    } else {
    }
    %c0 = arith.constant 0 : index
    %c0_1 = arith.constant 0 : index
    %3 = vector.load %arg8[%c0, %c0_1] : memref<16x32xf32, #tpu.memory_space<vmem>>, vector<16x32xf32>
    %c0_2 = arith.constant 0 : index
    %c0_3 = arith.constant 0 : index
    %4 = vector.load %arg2[%c0_2, %c0_3] : memref<16x64xf32, #tpu.memory_space<vmem>>, vector<16x64xf32>
    %c0_4 = arith.constant 0 : index
    %c0_5 = arith.constant 0 : index
    %5 = vector.load %arg3[%c0_4, %c0_5] : memref<64x32xf32, #tpu.memory_space<vmem>>, vector<64x32xf32>
    %cst = arith.constant dense<0.000000e+00> : vector<16x32xf32>
    %6 = tpu.matmul %4, %5, %cst {dimension_numbers = #tpu.dot_dimension_numbers<[1], [0], [0], [1], [0, 0, 1, 1], [], []>} : vector<16x64xf32>, vector<64x32xf32>, vector<16x32xf32> -> vector<16x32xf32>
    %7 = arith.addf %3, %6 : vector<16x32xf32>
    %c0_6 = arith.constant 0 : index
    %c0_7 = arith.constant 0 : index
    %8 = vector.load %arg8[%c0_6, %c0_7] : memref<16x32xf32, #tpu.memory_space<vmem>>, vector<16x32xf32>
    tpu.vector_store %arg8[%c0_6, %c0_7], %7 {strides = array<i32>} : memref<16x32xf32, #tpu.memory_space<vmem>>, vector<16x32xf32>,
    %c0_i32_8 = arith.constant 0 : i32
    %9 = arith.cmpi eq, %arg1, %c0_i32_8 : i32
    %10 = arith.extui %9 : i1 to i32
    %c0_i32_9 = arith.constant 0 : i32
    %11 = arith.cmpi ne, %10, %c0_i32_9 : i32
    scf.if %11 {
      %c0_10 = arith.constant 0 : index
      %c0_11 = arith.constant 0 : index
      %12 = vector.load %arg8[%c0_10, %c0_11] : memref<16x32xf32, #tpu.memory_space<vmem>>, vector<16x32xf32>
      %c0_12 = arith.constant 0 : index
      %c0_13 = arith.constant 0 : index
      %13 = vector.load %arg4[%c0_12, %c0_13] : memref<1x32xf32, #tpu.memory_space<vmem>>, vector<1x32xf32>
      %14 = vector.broadcast %13 : vector<1x32xf32> to vector<16x32xf32>
      %15 = arith.addf %12, %14 : vector<16x32xf32>
      %cst_14 = arith.constant 5.000000e-01 : f32
      %16 = vector.broadcast %cst_14 : f32 to vector<16x32xf32>
      %17 = arith.mulf %16, %15 : vector<16x32xf32>
      %cst_15 = arith.constant 4.471500e-02 : f32
      %18 = vector.broadcast %cst_15 : f32 to vector<16x32xf32>
      %19 = arith.mulf %18, %15 : vector<16x32xf32>
      %20 = arith.mulf %19, %15 : vector<16x32xf32>
      %21 = arith.mulf %20, %15 : vector<16x32xf32>
      %22 = arith.addf %15, %21 : vector<16x32xf32>
      %cst_16 = arith.constant 0.797884583 : f32
      %23 = vector.broadcast %cst_16 : f32 to vector<16x32xf32>
      %24 = arith.mulf %23, %22 : vector<16x32xf32>
      %25 = math.tanh %24 : vector<16x32xf32>
      %cst_17 = arith.constant 1.000000e+00 : f32
      %26 = vector.broadcast %cst_17 : f32 to vector<16x32xf32>
      %27 = arith.addf %26, %25 : vector<16x32xf32>
      %28 = arith.mulf %17, %27 : vector<16x32xf32>
      %cst_18 = arith.constant dense<0.000000e+00> : vector<16xf32>
      %29 = vector.multi_reduction <add>, %28, %cst_18 [1] : vector<16x32xf32> to vector<16xf32>
      %30 = vector.shape_cast %29 : vector<16xf32> to vector<16x1xf32>
      %31 = arith.mulf %28, %28 : vector<16x32xf32>
      %cst_19 = arith.constant dense<0.000000e+00> : vector<16xf32>
      %32 = vector.multi_reduction <add>, %31, %cst_19 [1] : vector<16x32xf32> to vector<16xf32>
      %33 = vector.shape_cast %32 : vector<16xf32> to vector<16x1xf32>
      %cst_20 = arith.constant 3.200000e+01 : f32
      %34 = vector.broadcast %cst_20 : f32 to vector<16x1xf32>
      %35 = arith.divf %30, %34 : vector<16x1xf32>
      %cst_21 = arith.constant 3.200000e+01 : f32
      %36 = vector.broadcast %cst_21 : f32 to vector<16x1xf32>
      %37 = arith.divf %33, %36 : vector<16x1xf32>
      %38 = arith.mulf %35, %35 : vector<16x1xf32>
      %39 = arith.subf %37, %38 : vector<16x1xf32>
      %cst_22 = arith.constant 0.000000e+00 : f32
      %40 = vector.broadcast %cst_22 : f32 to vector<16x1xf32>
      %41 = arith.maximumf %39, %40 : vector<16x1xf32>
      %cst_23 = arith.constant 9.99999996E-13 : f32
      %42 = vector.broadcast %cst_23 : f32 to vector<16x1xf32>
      %43 = arith.addf %41, %42 : vector<16x1xf32>
      %44 = math.rsqrt %43 : vector<16x1xf32>
      %45 = vector.broadcast %35 : vector<16x1xf32> to vector<16x32xf32>
      %46 = arith.subf %28, %45 : vector<16x32xf32>
      %47 = vector.broadcast %44 : vector<16x1xf32> to vector<16x32xf32>
      %48 = arith.mulf %46, %47 : vector<16x32xf32>
      %c0_24 = arith.constant 0 : index
      %c0_25 = arith.constant 0 : index
      %49 = vector.load %arg5[%c0_24, %c0_25] : memref<1x32xf32, #tpu.memory_space<vmem>>, vector<1x32xf32>
      %50 = vector.broadcast %49 : vector<1x32xf32> to vector<16x32xf32>
      %51 = arith.mulf %48, %50 : vector<16x32xf32>
      %c0_26 = arith.constant 0 : index
      %c0_27 = arith.constant 0 : index
      %52 = vector.load %arg6[%c0_26, %c0_27] : memref<1x32xf32, #tpu.memory_space<vmem>>, vector<1x32xf32>
      %53 = vector.broadcast %52 : vector<1x32xf32> to vector<16x32xf32>
      %54 = arith.addf %51, %53 : vector<16x32xf32>
      %c0_28 = arith.constant 0 : index
      %c0_29 = arith.constant 0 : index
      %55 = vector.load %arg7[%c0_28, %c0_29] : memref<16x32xf32, #tpu.memory_space<vmem>>, vector<16x32xf32>
      tpu.vector_store %arg7[%c0_28, %c0_29], %54 {strides = array<i32>} : memref<16x32xf32, #tpu.memory_space<vmem>>, vector<16x32xf32>,
    } else {
    }
    return
  }
  func.func @transform_0(%arg0: i32, %arg1: i32) -> (i32, i32) {
    %c0_i32 = arith.constant 0 : i32
    return %arg0, %arg1 : i32, i32
  }
  func.func @transform_1(%arg0: i32, %arg1: i32) -> (i32, i32) {
    %c0_i32 = arith.constant 0 : i32
    %c0_i32_0 = arith.constant 0 : i32
    return %arg1, %c0_i32 : i32, i32
  }
  func.func @transform_2(%arg0: i32, %arg1: i32) -> (i32, i32) {
    %c0_i32 = arith.constant 0 : i32
    %c0_i32_0 = arith.constant 0 : i32
    %c0_i32_1 = arith.constant 0 : i32
    return %c0_i32, %c0_i32_0 : i32, i32
  }
  func.func @transform_3(%arg0: i32, %arg1: i32) -> (i32, i32) {
    %c0_i32 = arith.constant 0 : i32
    %c0_i32_0 = arith.constant 0 : i32
    %c0_i32_1 = arith.constant 0 : i32
    return %c0_i32, %c0_i32_0 : i32, i32
  }
  func.func @transform_4(%arg0: i32, %arg1: i32) -> (i32, i32) {
    %c0_i32 = arith.constant 0 : i32
    %c0_i32_0 = arith.constant 0 : i32
    %c0_i32_1 = arith.constant 0 : i32
    return %c0_i32, %c0_i32_0 : i32, i32
  }
  func.func @transform_5(%arg0: i32, %arg1: i32) -> (i32, i32) {
    %c0_i32 = arith.constant 0 : i32
    %c0_i32_0 = arith.constant 0 : i32
    return %arg0, %c0_i32 : i32, i32
  }
}

</mosaic_0001>

<bundles_post_ra>
// kernel: tpu_custom_call.1
= control target key start
LH: loop header
LB: loop body
LE: loop exit
PB: predicated region body
PF: predicated region fallthrough
CT: control target
= control target key end

     0   :  { %vm40_vm0 = vcmask 523264   ;;  %vm25_vm1 = vcmask 261120   ;;  %v296_v2 = vmov 0.0   ;;  %s384_s0 = inlined_call_operand.vmem [shape: f32[16,64], index: 0, kind: input, shape index: {}]   ;;  %s385_s1 = inlined_call_operand.vmem [shape: f32[64,32], index: 1, kind: input, shape index: {}]   ;;  %s386_s2 = inlined_call_operand.vmem [shape: f32[1,32], index: 2, kind: input, shape index: {}]   ;;  %s387_s3 = inlined_call_operand.vmem [shape: f32[1,32], index: 3, kind: input, shape index: {}]   ;;  %s388_s4 = inlined_call_operand.vmem [shape: f32[1,32], index: 4, kind: input, shape index: {}]   ;;  %s389_s5 = inlined_call_operand.hbm [shape: f32[16,32], index: 5, kind: output, shape index: {}]  }
   0x1   :  { %v39_v0 = vld [vmem:[%s385_s1 + $0x38] sm:$0xff]  ;;  %v38_v1 = vld [vmem:[%s385_s1 + $0x30] sm:$0xff]  ;;  %27 = vst.msk [vmem:[#allocation2 + $0x8] sm:$0xff] %vm25_vm1, %v296_v2  ;;  %26 = vst.msk [vmem:[#allocation2] sm:$0xff] %vm25_vm1, %v296_v2 }
   0x2   :  { %243 = vmatprep.subr.mxu0 %v39_v0  ;;  %v37_v3 = vld [vmem:[%s385_s1 + $0x28] sm:$0xff]  ;;  %v30_v4 = vld [vmem:[%s384_s0] sm:$0xff] }
   0x3   :  { %244 = vmatpush3.msra.mxu0 %v39_v0  ;;  %259 = vmatprep.mubr.msk.f32.mxu0 %vm40_vm0, %v30_v4 }
   0x4   :  { %245 = vmatprep.subr.mxu0 %v38_v1 }
   0x5   :  { %10 = vsyncpa [#allocation4], 0  ;;  %246 = vmatpush3.msra.mxu0 %v38_v1  ;;  %v36_v5 = vld [vmem:[%s385_s1 + $0x20] sm:$0xff]  ;;  %v35_v6 = vld [vmem:[%s385_s1 + $0x18] sm:$0xff]  ;;  %s297_s16 = smov [#allocation3]  }
   0x6   :  { %247 = vmatprep.subr.mxu0 %v37_v3  ;;  %v34_v7 = vld [vmem:[%s385_s1 + $0x10] sm:$0xff]  ;;  %v33_v8 = vld [vmem:[%s385_s1 + $0x8] sm:$0xff]  ;;  %v32_v9 = vld [vmem:[%s385_s1] sm:$0xff]  ;;  %s217_s17 = sshll.u32 %s297_s16, 4  ;;  %s218_s17 = int_to_ptr.vmem [resolvable:$true] %s217_s17 }
   0x7   :  { %248 = vmatpush3.msra.mxu0 %v37_v3  ;;  %v31_v10 = vld [vmem:[%s384_s0 + $0x8] sm:$0xff]  ;;  %v230_v17 = vld [vmem:[%s386_s2] ss:$0 sm:$0xff]  ;;  %p279_p1 = scmp.lt.s32.totalorder %s218_s17, %s218_s17 }
   0x8   :  { %249 = vmatprep.subr.mxu0 %v36_v5  ;;  %v29_v11 = vld [vmem:[#allocation2 + $0x8] sm:$0xff]  ;;  %v28_v13 = vld [vmem:[#allocation2] sm:$0xff] }
   0x9   :  { %250 = vmatpush3.msra.mxu0 %v36_v5  ;;  %v231_v0 = vld [vmem:[%s387_s3] ss:$0 sm:$0xff]  ;;  %s274_s3 = scalar_lea.vmem %s218_s17, 256 }
   0xa   :  { %251 = vmatprep.subr.mxu0 %v35_v6  ;;  %v232_v2 = vld [vmem:[%s388_s4] ss:$0 sm:$0xff]  ;;  %p275_p0 = scmp.ne.s32.totalorder %s218_s17, %s274_s3  ;;  %p280_p2 = scmp.lt.s32.totalorder %s274_s3, %s274_s3 }
   0xb   :  { %252 = vmatpush3.msra.mxu0 %v35_v6 }
   0xc   :  { %253 = vmatprep.subr.mxu0 %v34_v7  ;;  %p281_p3 = por %p280_p2, %p279_p1 }
   0xd   :  { %254 = vmatpush3.msra.mxu0 %v34_v7 }
   0xe   :  { %255 = vmatprep.subr.mxu0 %v33_v8  ;;  %p282_p4 = pnand %p281_p3, %p275_p0 }
   0xf   :  { %256 = vmatpush3.msra.mxu0 %v33_v8 }
  0x10   :  { %257 = vmatprep.subr.mxu0 %v32_v9 }
  0x11   :  { %258 = vmatpush3.msra.mxu0 %v32_v9 }
  0x12   :  { %260 = vmatmul.mubr.msk.f32.vlgmr.msra.gmra.mxu0 %vm40_vm0, %v31_v10 }
  0xd2   :  { %v261_v12 = vpop.f32.mrf.mxu0 }
  0xd3   :  { %v123_v14 = vadd.f32 %v261_v12, %v29_v11 }
  0xd4   :  { %v113_v15 = vpop.f32.mrf.mxu0 }
  0xd5   :  { %126 = vst.msk [vmem:[#allocation2 + $0x8] sm:$0xff] %vm25_vm1, %v123_v14  ;;  %v122_v16 = vadd.f32 %v113_v15, %v28_v13 }
  0xd7   :  { %125 = vst.msk [vmem:[#allocation2] sm:$0xff] %vm25_vm1, %v122_v16 }
  0xdc   :  { %v131_v18 = vld [vmem:[#allocation2 + $0x8] sm:$0xff] }
  0xdd   :  { %v140_v19 = vadd.f32 %v230_v17, %v131_v18 }
  0xde   :  { %v130_v20 = vld [vmem:[#allocation2] sm:$0xff] }
  0xdf   :  { %v139_v21 = vadd.f32 %v230_v17, %v130_v20  ;;  %v144_v22 = vmul.f32 0.044715, %v140_v19  ;;  %v142_v37 = vmul.f32 0.5, %v140_v19 }
  0xe1   :  { %v143_v23 = vmul.f32 0.044715, %v139_v21  ;;  %v146_v24 = vmul.f32 %v144_v22, %v140_v19  ;;  %v141_v35 = vmul.f32 0.5, %v139_v21 }
  0xe3   :  { %v145_v25 = vmul.f32 %v143_v23, %v139_v21  ;;  %v148_v26 = vmul.f32 %v146_v24, %v140_v19 }
  0xe5   :  { %v147_v27 = vmul.f32 %v145_v25, %v139_v21  ;;  %v150_v28 = vadd.f32 %v148_v26, %v140_v19 }
  0xe7   :  { %v149_v29 = vadd.f32 %v147_v27, %v139_v21  ;;  %v152_v30 = vmul.f32 0.7978846, %v150_v28 }
  0xe9   :  { %v151_v31 = vmul.f32 0.7978846, %v149_v29  ;;  %266 = vtanh.f32 %v152_v30 }
  0xeb   :  { %268 = vtanh.f32 %v151_v31 }
  0xf6   :  { %v267_v32 = vpop.eup %266 }
  0xf7   :  { %v156_v33 = vadd.f32 1.0, %v267_v32 }
  0xf8   :  { %v269_v34 = vpop.eup %268 }
  0xf9   :  { %v155_v36 = vadd.f32 1.0, %v269_v34  ;;  %v158_v39 = vmul.f32 %v156_v33, %v142_v37 }
  0xfb   :  { %v157_v38 = vmul.f32 %v155_v36, %v141_v35  ;;  %v166_v43 = vmul.f32 %v158_v39, %v158_v39  ;;  %v162_v44 = vsel %vm25_vm1, %v158_v39, 0.0 }
  0xfd   :  { %v159_v40 = vsel %vm25_vm1, %v157_v38, 0.0  ;;  %v165_v41 = vmul.f32 %v157_v38, %v157_v38  ;;  %v170_v45 = vsel %vm25_vm1, %v166_v43, 0.0 }
  0xfe   :  { %160 = vadd.xlane.f32.xlu0 %v159_v40 }
  0xff   :  { %v167_v42 = vsel %vm25_vm1, %v165_v41, 0.0 }
 0x100   :  { %168 = vadd.xlane.f32.xlu1 %v167_v42 }
 0x102   :  { %163 = vadd.xlane.f32.xlu0 %v162_v44 }
 0x104   :  { %171 = vadd.xlane.f32.xlu1 %v170_v45 }
 0x187   :  { %v161_v46 = vpop.xlane.xlu0 %160 }
 0x188   :  { %v174_v47 = vmul.f32 0.03125, %v161_v46 }
 0x189   :  { %v169_v48 = vpop.xlane.xlu1 %168 }
 0x18a   :  { %v178_v49 = vmul.f32 %v174_v47, %v174_v47  ;;  %v176_v50 = vmul.f32 0.03125, %v169_v48  ;;  %v188_v62 = vsub.f32 %v157_v38, %v174_v47 }
 0x18b   :  { %v164_v51 = vpop.xlane.xlu0 %163 }
 0x18c   :  { %v180_v52 = vsub.f32 %v176_v50, %v178_v49  ;;  %v175_v53 = vmul.f32 0.03125, %v164_v51 }
 0x18d   :  { %v172_v54 = vpop.xlane.xlu1 %171 }
 0x18e   :  { %v182_v55 = vmax.f32 %v180_v52, 0.0  ;;  %v179_v56 = vmul.f32 %v175_v53, %v175_v53  ;;  %v177_v57 = vmul.f32 0.03125, %v172_v54  ;;  %v189_v3 = vsub.f32 %v158_v39, %v175_v53 }
 0x190   :  { %v184_v58 = vadd.f32 1e-12, %v182_v55  ;;  %v181_v59 = vsub.f32 %v177_v57, %v179_v56 }
 0x192   :  { %270 = vrsqrt.f32 %v184_v58  ;;  %v183_v60 = vmax.f32 %v181_v59, 0.0 }
 0x194   :  { %v185_v61 = vadd.f32 1e-12, %v183_v60 }
 0x196   :  { %272 = vrsqrt.f32 %v185_v61 }
 0x19f   :  { %v271_v63 = vpop.eup %270 }
 0x1a0   :  { %v190_v1 = vmul.f32 %v271_v63, %v188_v62 }
 0x1a2   :  { %v199_v4 = vmul.f32 %v231_v0, %v190_v1 }
 0x1a3   :  { %v273_v5 = vpop.eup %272 }
 0x1a4   :  { %v191_v6 = vmul.f32 %v273_v5, %v189_v3  ;;  %v208_v7 = vadd.f32 %v232_v2, %v199_v4 }
 0x1a6   :  { %v200_v8 = vmul.f32 %v231_v0, %v191_v6  ;;  %210 = vst.msk [vmem:[#allocation3] sm:$0xff] %vm25_vm1, %v208_v7 }
 0x1a8   :  { %v209_v9 = vadd.f32 %v232_v2, %v200_v8 }
 0x1aa   :  { %211 = vst.msk [vmem:[#allocation3 + $0x8] sm:$0xff] %vm25_vm1, %v209_v9 }
 0x1ab   :  { %285 = shalt.err (!%p282_p4)
}
 0x1ac   :  { %s298_s4 = smov 128   ;;  %s299_s18 = smov 8  }
 0x1ad   :  { %223 = dma.vmem_to_hbm [thread:$0]  %s218_s17, 256, %s389_s5, [#allocation4], %s298_s4, %s298_s4, %s299_s18  }
 0x1ae   :  { %294 = dma.done.wait [#allocation4], 256  }
 0x1af   :  { %295 = vsyncadd [#allocation4], 4294967040 }
 0x1b0   :  { %227 = vsyncpa [#allocation4], 1 }

</bundles_post_ra>
